<compile_context>
chip_gen: v6e
topology: v6e:2x2x1
jax: 0.10.0
libtpu: 0.0.40
codegen_flags: <defaults>
</compile_context>

<pallas_src>
import jax
import jax.numpy as jnp
from jax.experimental import pallas as pl
from jax.experimental.pallas import tpu as pltpu


def _h_sigmoid_kernel(x_ref, o_ref):
    # Compute in f32 and use a real divide so relu6(x+3)/6 saturates to
    # exactly 1.0 regardless of the input dtype, then cast back.
    x = x_ref[...].astype(jnp.float32)
    o_ref[...] = (jnp.clip(x + 3.0, 0.0, 6.0) / 6.0).astype(o_ref.dtype)


# One VMEM tile buffer target.  Input + output are each double-buffered, so the
# pipeline holds ~4x this (16 MiB).  We raise the scoped-VMEM limit to 32 MiB
# explicitly, which fits physical VMEM on every generation (v5e/v6e: 128 MiB,
# v7x: 64 MiB) and leaves headroom for internal scratch.
_TARGET_TILE_BYTES = 4 << 20   # at/above the measured ~2 MiB roofline knee
_VMEM_LIMIT_BYTES = 32 << 20


def _h_sigmoid_2d(x2d: jax.Array) -> jax.Array:
    """Run the elementwise kernel over a 2-D slab, tiling along rows."""
    R, C = x2d.shape
    dtype = x2d.dtype
    itemsize = jnp.dtype(dtype).itemsize
    # Packed-sublane row multiple: 8 for 4-byte, 16 for 2-byte, 32 for 1-byte.
    sub = max(8, 32 // max(itemsize, 1))
    bytes_per_row = C * itemsize
    total_bytes = R * bytes_per_row

    # Byte-based row tile: keep tr*C*itemsize near the target regardless of
    # lane width (no fixed row cap).
    tr = (_TARGET_TILE_BYTES // max(bytes_per_row, 1)) // sub * sub
    tr = max(sub, tr)

    if C % 128 != 0:
        # Only tiny (<128-element) ragged tails reach this branch; one
        # full-array block (block_shape == array dims) is always legal.
        grid = (1,)
        block = (R, C)
        index_map = lambda i: (0, 0)
    else:
        if tr >= R and total_bytes > (1 << 20) and R >= 2 * sub:
            # Whole slab would fit one tile: split rows into >=2 blocks so both
            # v7x TensorCores get work ("parallel" axis).  On single-TC
            # v5e/v6e this only costs one extra ~0.35us grid step.
            tr = max(sub, (R // 2) // sub * sub)
        if tr >= R:
            grid = (1,)
            block = (R, C)
            index_map = lambda i: (0, 0)
        else:
            # tr % sub == 0 and C % 128 == 0; a ragged last row block is
            # boundary-masked, harmless for a pure elementwise op.
            grid = (pl.cdiv(R, tr),)
            block = (tr, C)
            index_map = lambda i: (i, 0)

    return pl.pallas_call(
        _h_sigmoid_kernel,
        out_shape=jax.ShapeDtypeStruct((R, C), dtype),
        grid=grid,
        in_specs=[pl.BlockSpec(block, index_map)],
        out_specs=pl.BlockSpec(block, index_map),
        compiler_params=pltpu.CompilerParams(
            dimension_semantics=("parallel",),
            vmem_limit_bytes=_VMEM_LIMIT_BYTES,
        ),
    )(x2d)


def h_sigmoid(x: jax.Array) -> jax.Array:
    """Applies h_sigmoid elementwise. Accepts any shape (NCHW expected)."""
    orig_shape = x.shape
    n = x.size
    if n == 0:
        return x

    xf = x.reshape(-1)  # contiguous flatten: free in XLA

    # Prefer a large lane-dense width that divides the element count exactly,
    # so no padding and no output stitching is required.
    lane = next((c for c in (1024, 512, 256, 128) if n % c == 0), None)
    if lane is not None:
        return _h_sigmoid_2d(xf.reshape(n // lane, lane)).reshape(orig_shape)

    # Ragged element count (not a multiple of 128): run the largest
    # multiple-of-128 prefix through the lane-dense tiled path and the
    # <128-element tail through a tiny single block, then stitch.  >99.9% of
    # the data stays on the full-speed path; the slice/concat cost only hits
    # this rare case.
    n_main = (n // 128) * 128
    if n_main == 0:
        return _h_sigmoid_2d(xf.reshape(1, n)).reshape(orig_shape)
    lane = next((c for c in (1024, 512, 256) if n_main % c == 0), 128)
    y_main = _h_sigmoid_2d(xf[:n_main].reshape(n_main // lane, lane)).reshape(-1)
    y_tail = _h_sigmoid_2d(xf[n_main:].reshape(1, n - n_main)).reshape(-1)
    # TODO(synk): for end-to-end model perf, h_sigmoid should be fused into
    # the producing op's epilogue rather than run as a standalone HBM pass.
    return jnp.concatenate([y_main, y_tail]).reshape(orig_shape)


def _ref(x):
    xf = x.astype(jnp.float32)
    return (jnp.clip(xf + 3.0, 0.0, 6.0) / 6.0).astype(x.dtype)


if __name__ == "__main__":
    key = jax.random.PRNGKey(0)
    k0, k1, k2, k3 = jax.random.split(key, 4)

    # 1) NCHW input as the PyTorch module would see it (single-tile path).
    x = jax.random.normal(k0, (2, 4, 16, 16), dtype=jnp.float32) * 4.0
    y = jax.block_until_ready(h_sigmoid(x))
    assert y.shape == x.shape and y.dtype == x.dtype
    assert jnp.max(jnp.abs(y - _ref(x))) < 1e-6

    # 2) Medium slab: exercises the row-tiled / two-block (dual-TC) path.
    x_m = jax.random.normal(k1, (8, 32, 56, 56), dtype=jnp.float32) * 4.0
    y_m = jax.block_until_ready(h_sigmoid(x_m))
    assert jnp.max(jnp.abs(y_m - _ref(x_m))) < 1e-6

    # 3) Ragged element count (prefix + tail path).
    x_r = jax.random.normal(k2, (3, 5, 7, 9), dtype=jnp.float32) * 4.0
    y_r = jax.block_until_ready(h_sigmoid(x_r))
    assert y_r.shape == x_r.shape
    assert jnp.max(jnp.abs(y_r - _ref(x_r))) < 1e-6

    # 4) bf16: saturated region must be exactly 1.0 (f32 compute + real divide).
    x_b = (jax.random.normal(k3, (2, 4, 16, 16), dtype=jnp.float32) * 4.0).astype(jnp.bfloat16)
    y_b = jax.block_until_ready(h_sigmoid(x_b))
    assert y_b.dtype == jnp.bfloat16
    assert jnp.max(jnp.abs(y_b.astype(jnp.float32) - _ref(x_b).astype(jnp.float32))) == 0.0
    assert jnp.all(jnp.where(x_b.astype(jnp.float32) >= 3.0, y_b.astype(jnp.float32) == 1.0, True))

    print("KERNEL_OK")
</pallas_src>

<mosaic_0001>
module attributes {stable_mosaic.version = 11 : i64} {
  func.func @_h_sigmoid_kernel(%arg0: i32, %arg1: memref<2x1024xf32, #tpu.memory_space<vmem>>, %arg2: memref<2x1024xf32, #tpu.memory_space<vmem>>) attributes {dimension_semantics = [#tpu.dimension_semantics<parallel>], iteration_bounds = array<i64: 1>, scalar_prefetch = 0 : i64, scratch_operands = 0 : i64, tpu.core_type = #tpu.core_type<tc>, window_params = [{pipeline_mode = #tpu.pipeline_mode<synchronous>, transform_indices = @transform_0, window_bounds = array<i64: 2, 1024>}, {pipeline_mode = #tpu.pipeline_mode<synchronous>, transform_indices = @transform_1, window_bounds = array<i64: 2, 1024>}]} {
    %c0 = arith.constant 0 : index
    %c0_0 = arith.constant 0 : index
    %0 = vector.load %arg1[%c0, %c0_0] : memref<2x1024xf32, #tpu.memory_space<vmem>>, vector<2x1024xf32>
    %cst = arith.constant 3.000000e+00 : f32
    %1 = vector.broadcast %cst : f32 to vector<2x1024xf32>
    %2 = arith.addf %0, %1 : vector<2x1024xf32>
    %cst_1 = arith.constant 0.000000e+00 : f32
    %cst_2 = arith.constant 6.000000e+00 : f32
    %3 = vector.broadcast %cst_1 : f32 to vector<2x1024xf32>
    %4 = arith.maximumf %3, %2 : vector<2x1024xf32>
    %5 = vector.broadcast %cst_2 : f32 to vector<2x1024xf32>
    %6 = arith.minimumf %5, %4 : vector<2x1024xf32>
    %cst_3 = arith.constant 6.000000e+00 : f32
    %7 = vector.broadcast %cst_3 : f32 to vector<2x1024xf32>
    %8 = arith.divf %6, %7 : vector<2x1024xf32>
    %c0_4 = arith.constant 0 : index
    %c0_5 = arith.constant 0 : index
    %9 = vector.load %arg2[%c0_4, %c0_5] : memref<2x1024xf32, #tpu.memory_space<vmem>>, vector<2x1024xf32>
    tpu.vector_store %arg2[%c0_4, %c0_5], %8 {strides = array<i32>} : memref<2x1024xf32, #tpu.memory_space<vmem>>, vector<2x1024xf32>,
    return
  }
  func.func @transform_0(%arg0: i32) -> (i32, i32) {
    %c0_i32 = arith.constant 0 : i32
    %c0_i32_0 = arith.constant 0 : i32
    %c0_i32_1 = arith.constant 0 : i32
    return %c0_i32, %c0_i32_0 : i32, i32
  }
  func.func @transform_1(%arg0: i32) -> (i32, i32) {
    %c0_i32 = arith.constant 0 : i32
    %c0_i32_0 = arith.constant 0 : i32
    %c0_i32_1 = arith.constant 0 : i32
    return %c0_i32, %c0_i32_0 : i32, i32
  }
}

</mosaic_0001>

<bundles_post_ra>
// kernel: tpu_custom_call.1
= control target key start
LH: loop header
LB: loop body
LE: loop exit
PB: predicated region body
PF: predicated region fallthrough
CT: control target
= control target key end

     0   :  { %6 = vsyncpa [#allocation3], 0  ;;  %s113_s0 = inlined_call_operand.hbm [shape: f32[2,1024], index: 0, kind: input, shape index: {}]   ;;  %s114_s1 = inlined_call_operand.hbm [shape: f32[2,1024], index: 1, kind: output, shape index: {}]  }
   0x1   :  { %7 = vsyncpa [#allocation4], 0  ;;  %s95_s6 = smov [#allocation2]  }
   0x2   :  { %s14_s7 = sshll.u32 %s95_s6, 4  ;;  %s15_s7 = int_to_ptr.vmem [resolvable:$true] %s14_s7 }
   0x3   :  { %s59_s8 = scalar_lea.vmem %s15_s7, 256  ;;  %p64_p1 = scmp.lt.s32.totalorder %s15_s7, %s15_s7 }
   0x4   :  { %p60_p0 = scmp.ne.s32.totalorder %s15_s7, %s59_s8  ;;  %p65_p2 = scmp.lt.s32.totalorder %s59_s8, %s59_s8 }
   0x6   :  { %p66_p3 = por %p65_p2, %p64_p1 }
   0x8   :  { %p67_p4 = pnand %p66_p3, %p60_p0 }
   0xa   :  { %70 = shalt.err (!%p67_p4)
}
   0xb   :  { %17 = dma.hbm_to_vmem [thread:$0]  %s113_s0, 256, %s15_s7, [#allocation3]  }
   0xc   :  { %91 = dma.done.wait [#allocation3], 256  }
   0xd   :  { %92 = vsyncadd [#allocation3], 4294967040  ;;  %v21_v0 = vld [vmem:[#allocation2] sm:$0xff]  ;;  %v22_v1 = vld [vmem:[#allocation2 + $0x8] sm:$0xff]  ;;  %s96_s11 = smov [#allocation5]  }
   0xe   :  { %v23_v2 = vadd.f32 3.0, %v21_v0  ;;  %v24_v3 = vadd.f32 3.0, %v22_v1  ;;  %s40_s12 = sshll.u32 %s96_s11, 4  ;;  %s41_s12 = int_to_ptr.vmem [resolvable:$true] %s40_s12 }
   0xf   :  { %s71_s13 = scalar_lea.vmem %s41_s12, 256  ;;  %p76_p6 = scmp.lt.s32.totalorder %s41_s12, %s41_s12 }
  0x10   :  { %v25_v4 = vmax.f32 %v23_v2, 0.0  ;;  %v26_v5 = vmax.f32 %v24_v3, 0.0  ;;  %p72_p5 = scmp.ne.s32.totalorder %s41_s12, %s71_s13  ;;  %p77_p7 = scmp.lt.s32.totalorder %s71_s13, %s71_s13 }
  0x12   :  { %v27_v6 = vmin.f32 %v25_v4, 6.0  ;;  %v28_v7 = vmin.f32 %v26_v5, 6.0  ;;  %p78_p8 = por %p77_p7, %p76_p6 }
  0x14   :  { %v30_v8 = vmul.f32 0.16666667, %v27_v6  ;;  %v31_v9 = vmul.f32 0.16666667, %v28_v7  ;;  %p79_p9 = pnand %p78_p8, %p72_p5 }
  0x16   :  { %32 = vst [vmem:[#allocation5] sm:$0xff] %v30_v8  ;;  %33 = vst [vmem:[#allocation5 + $0x8] sm:$0xff] %v31_v9 }
  0x17   :  { %82 = shalt.err (!%p79_p9)
}
  0x18   :  { %43 = dma.vmem_to_hbm [thread:$0]  %s41_s12, 256, %s114_s1, [#allocation4]  }
  0x19   :  { %93 = dma.done.wait [#allocation4], 256  }
  0x1a   :  { %94 = vsyncadd [#allocation4], 4294967040 }
  0x1b   :  { %47 = vsyncpa [#allocation3], 1 }
  0x1c   :  { %48 = vsyncpa [#allocation4], 1 }

</bundles_post_ra>
